<compile_context>
chip_gen: v7x
topology: tpu7x:2x2x1
jax: 0.10.0
libtpu: 0.0.40
codegen_flags: <defaults>
</compile_context>

<pallas_src>
import jax
import jax.numpy as jnp
from jax.experimental import pallas as pl
from jax.experimental.pallas import tpu as pltpu

LANE = 128


def _round_up(a, b):
    return (a + b - 1) // b * b


def _make_kernel(tile_n, C, tile_hw, hw, n_hw_steps, slab_c):
    inv_hw = 1.0 / float(hw)
    full_chunks = tile_hw // LANE
    tail_lanes = hw - (n_hw_steps - 1) * tile_hw          # 1 .. tile_hw
    tail_chunks = -(-tail_lanes // LANE)
    tail_partial = tail_lanes - (tail_chunks - 1) * LANE  # 1 .. LANE
    last_step_differs = tail_lanes != tile_hw

    def kernel(x_ref, w1t_ref, w2t_ref, o_ref, sum_acc, max_acc):
        hw_step = pl.program_id(1)

        @pl.when(hw_step == 0)
        def _init():
            sum_acc[...] = jnp.zeros_like(sum_acc)
            max_acc[...] = jnp.full_like(max_acc, -jnp.inf)

        def accumulate(n_chunks, partial_lanes):
            # partial_lanes == LANE -> last chunk is full (no masking needed).
            mask_last = partial_lanes < LANE
            if mask_last:
                lane = jax.lax.broadcasted_iota(jnp.int32, (1, 1, LANE), 2)
                valid = lane < partial_lanes              # trace-time constant mask
            for c0 in range(0, C, slab_c):                # channel slabs keep live
                c1 = min(C, c0 + slab_c)                  # vregs bounded (no spills)
                s = sum_acc[:, c0:c1, :]
                m = max_acc[:, c0:c1, :]
                for k in range(n_chunks):                 # static, lane-aligned
                    lo = k * LANE
                    xk = x_ref[:, c0:c1, lo:lo + LANE].astype(jnp.float32)
                    if mask_last and k == n_chunks - 1:
                        s = s + jnp.where(valid, xk, 0.0)
                        m = jnp.maximum(m, jnp.where(valid, xk, -jnp.inf))
                    else:
                        s = s + xk
                        m = jnp.maximum(m, xk)
                sum_acc[:, c0:c1, :] = s
                max_acc[:, c0:c1, :] = m

        if last_step_differs:
            @pl.when(hw_step < n_hw_steps - 1)
            def _acc_full():
                accumulate(full_chunks, LANE)

            @pl.when(hw_step == n_hw_steps - 1)
            def _acc_tail():
                accumulate(tail_chunks, tail_partial)
        else:
            accumulate(full_chunks, LANE)

        @pl.when(hw_step == n_hw_steps - 1)
        def _finalize():
            # Single cross-lane reduce per output tile (XLU, runs once).
            avg_p = jnp.sum(sum_acc[...], axis=-1) * inv_hw      # (tile_n, C)
            max_p = jnp.max(max_acc[...], axis=-1)               # (tile_n, C)

            w1t = w1t_ref[...].astype(jnp.float32)               # (C, Cr)
            w2t = w2t_ref[...].astype(jnp.float32)               # (Cr, C)

            # Stacked fc1 (one matmul), relu, sum halves, single fc2
            # (fc2 is bias-free, so fc2(a) + fc2(b) == fc2(a + b)).
            p = jnp.concatenate([avg_p, max_p], axis=0)          # (2*tile_n, C)
            h = jnp.dot(p, w1t, preferred_element_type=jnp.float32)
            h = jnp.maximum(h, 0.0)
            h = h[:tile_n] + h[tile_n:]                          # (tile_n, Cr)
            out = jnp.dot(h, w2t, preferred_element_type=jnp.float32)
            o_ref[...] = jax.nn.sigmoid(out)[..., None].astype(o_ref.dtype)

    return kernel


def channel_attention(x, w1, w2, *, max_tile_hw=None):
    """x: (N, C, H, W); w1: (Cr, C); w2: (C, Cr).  Returns the gate (N, C, 1, 1)."""
    N, C, H, W = x.shape
    Cr = w1.shape[0]
    HW = H * W
    dtype = x.dtype
    item = jnp.dtype(dtype).itemsize

    # ---- per-generation VMEM budget (v7x: 64 MiB, v5e/v6e: 128 MiB) ----------
    try:
        vmem_cap = int(pltpu.get_tpu_info().vmem_capacity_bytes)
    except Exception:
        vmem_cap = 64 * 1024 * 1024               # conservative (v7x per-core)
    vmem_limit = int(min((vmem_cap * 3) // 4, 96 * 1024 * 1024))

    # ---- batch tile: keep >=2 blocks on the "parallel" axis when N >= 2 ------
    tile_n = max(1, min(8, -(-N // 2)))

    def tile_lanes(tn):
        scratch = 2 * tn * C * LANE * 4           # f32 sum / max partials
        weights = 2 * 2 * C * Cr * item           # both weights, double buffered
        budget = vmem_limit - scratch - weights - (1 << 20)
        per_lane = 2 * tn * C * item              # double-buffered streamed x
        return max(0, (budget // per_lane) // LANE * LANE)

    # For large C, shrink tile_n before letting tile_hw collapse below 512 lanes.
    while tile_n > 1 and tile_lanes(tile_n) < 4 * LANE:
        tile_n = max(1, tile_n // 2)

    # Channel slab for the in-kernel accumulation (bounds live vregs / spills).
    slab_c = C if C <= 8 else min(C, max(8, ((32 // tile_n) // 8) * 8))
    n_slabs = -(-C // slab_c)

    # Bound the statically-unrolled work per grid step while allowing big tiles.
    max_chunks = max(8, min(64, 1024 // n_slabs))
    hw_cap = max_chunks * LANE
    if max_tile_hw is not None:
        hw_cap = min(hw_cap, max(LANE, (int(max_tile_hw) // LANE) * LANE))
    tile_hw = int(max(LANE, min(_round_up(HW, LANE), tile_lanes(tile_n), hw_cap)))
    n_hw_steps = int(pl.cdiv(HW, tile_hw))

    # ---- layout: flatten spatial into the lane axis (no copy, NO padding) ----
    x_flat = x.reshape(N, C, HW)
    w1t = jnp.transpose(w1)                       # (C, Cr): fc1 as right-multiply
    w2t = jnp.transpose(w2)                       # (Cr, C): fc2 as right-multiply

    kernel = _make_kernel(tile_n, C, tile_hw, HW, n_hw_steps, slab_c)
    grid = (int(pl.cdiv(N, tile_n)), n_hw_steps)

    out = pl.pallas_call(
        kernel,
        out_shape=jax.ShapeDtypeStruct((N, C, 1), dtype),
        grid_spec=pltpu.PrefetchScalarGridSpec(
            num_scalar_prefetch=0,
            grid=grid,
            in_specs=[
                pl.BlockSpec((tile_n, C, tile_hw), lambda n, h: (n, 0, h)),
                pl.BlockSpec((C, Cr), lambda n, h: (0, 0)),   # resident weight
                pl.BlockSpec((Cr, C), lambda n, h: (0, 0)),   # resident weight
            ],
            out_specs=pl.BlockSpec((tile_n, C, 1), lambda n, h: (n, 0, 0)),
            scratch_shapes=[
                pltpu.VMEM((tile_n, C, LANE), jnp.float32),   # running sum partials
                pltpu.VMEM((tile_n, C, LANE), jnp.float32),   # running max partials
            ],
        ),
        compiler_params=pltpu.CompilerParams(
            dimension_semantics=("parallel", "arbitrary"),
            vmem_limit_bytes=vmem_limit,
        ),
    )(x_flat, w1t, w2t)

    return out.reshape(N, C, 1, 1)


def channel_attention_ref(x, w1, w2):
    """Pure-JAX reference mirroring the PyTorch forward."""
    avg_p = jnp.mean(x, axis=(2, 3))  # (N, C)
    max_p = jnp.max(x, axis=(2, 3))   # (N, C)

    def mlp(p):
        h = jnp.maximum(p @ w1.T, 0.0)  # (N, Cr)
        return h @ w2.T                 # (N, C)

    out = jax.nn.sigmoid(mlp(avg_p) + mlp(max_p))
    return out.reshape(*out.shape, 1, 1)


if __name__ == "__main__":
    key = jax.random.PRNGKey(0)
    k = jax.random.split(key, 6)

    # Primary check: N=2, C=32 (ratio=8 -> Cr=4), H=W=16.
    x = jax.random.normal(k[0], (2, 32, 16, 16), dtype=jnp.float32)
    w1 = jax.random.normal(k[1], (4, 32), dtype=jnp.float32) * 0.1
    w2 = jax.random.normal(k[2], (32, 4), dtype=jnp.float32) * 0.1
    out = jax.block_until_ready(channel_attention(x, w1, w2))
    ref = channel_attention_ref(x, w1, w2)
    assert out.shape == (2, 32, 1, 1), out.shape
    assert jnp.allclose(out, ref, atol=1e-5, rtol=1e-5), "primary mismatch vs reference"

    # Ragged-path check (no wrapper padding anywhere): N=3 (batch edge block),
    # C=24 (ragged channel slab, Cr=3), HW=600 with tile_hw forced to 256
    # (multi-step HW reduction + masked partial tail chunk).
    x2 = jax.random.normal(k[3], (3, 24, 20, 30), dtype=jnp.float32)
    w1b = jax.random.normal(k[4], (3, 24), dtype=jnp.float32) * 0.1
    w2b = jax.random.normal(k[5], (24, 3), dtype=jnp.float32) * 0.1
    out2 = jax.block_until_ready(channel_attention(x2, w1b, w2b, max_tile_hw=256))
    ref2 = channel_attention_ref(x2, w1b, w2b)
    assert out2.shape == (3, 24, 1, 1), out2.shape
    assert jnp.allclose(out2, ref2, atol=1e-5, rtol=1e-5), "ragged mismatch vs reference"

    print("KERNEL_OK")
</pallas_src>

<mosaic_0001>
module attributes {stable_mosaic.version = 11 : i64} {
  func.func @kernel(%arg0: i32, %arg1: i32, %arg2: memref<1x32x256xf32, #tpu.memory_space<vmem>>, %arg3: memref<32x4xf32, #tpu.memory_space<vmem>>, %arg4: memref<4x32xf32, #tpu.memory_space<vmem>>, %arg5: memref<1x32x1xf32, #tpu.memory_space<vmem>>, %arg6: memref<1x32x128xf32, #tpu.memory_space<vmem>>, %arg7: memref<1x32x128xf32, #tpu.memory_space<vmem>>) attributes {dimension_semantics = [#tpu.dimension_semantics<parallel>, #tpu.dimension_semantics<arbitrary>], iteration_bounds = array<i64: 2, 1>, scalar_prefetch = 0 : i64, scratch_operands = 2 : i64, tpu.core_type = #tpu.core_type<tc>, window_params = [{transform_indices = @transform_0, window_bounds = array<i64: 1, 32, 256>}, {pipeline_mode = #tpu.pipeline_mode<synchronous>, transform_indices = @transform_1, window_bounds = array<i64: 32, 4>}, {pipeline_mode = #tpu.pipeline_mode<synchronous>, transform_indices = @transform_2, window_bounds = array<i64: 4, 32>}, {transform_indices = @transform_3, window_bounds = array<i64: 1, 32, 1>}]} {
    %c0_i32 = arith.constant 0 : i32
    %0 = arith.cmpi eq, %arg1, %c0_i32 : i32
    %1 = arith.extui %0 : i1 to i32
    %c0_i32_0 = arith.constant 0 : i32
    %2 = arith.cmpi ne, %1, %c0_i32_0 : i32
    scf.if %2 {
      %cst = arith.constant 0.000000e+00 : f32
      %16 = vector.broadcast %cst : f32 to vector<1x32x128xf32>
      %c0_19 = arith.constant 0 : index
      %c0_20 = arith.constant 0 : index
      %c0_21 = arith.constant 0 : index
      %17 = vector.load %arg6[%c0_19, %c0_20, %c0_21] : memref<1x32x128xf32, #tpu.memory_space<vmem>>, vector<1x32x128xf32>
      tpu.vector_store %arg6[%c0_19, %c0_20, %c0_21], %16 {strides = array<i32>} : memref<1x32x128xf32, #tpu.memory_space<vmem>>, vector<1x32x128xf32>,
      %cst_22 = arith.constant 0xFF800000 : f32
      %18 = vector.broadcast %cst_22 : f32 to vector<1x32x128xf32>
      %c0_23 = arith.constant 0 : index
      %c0_24 = arith.constant 0 : index
      %c0_25 = arith.constant 0 : index
      %19 = vector.load %arg7[%c0_23, %c0_24, %c0_25] : memref<1x32x128xf32, #tpu.memory_space<vmem>>, vector<1x32x128xf32>
      tpu.vector_store %arg7[%c0_23, %c0_24, %c0_25], %18 {strides = array<i32>} : memref<1x32x128xf32, #tpu.memory_space<vmem>>, vector<1x32x128xf32>,
    } else {
    }
    %c0 = arith.constant 0 : index
    %c0_1 = arith.constant 0 : index
    %c0_2 = arith.constant 0 : index
    %3 = vector.load %arg6[%c0, %c0_1, %c0_2] : memref<1x32x128xf32, #tpu.memory_space<vmem>>, vector<1x32x128xf32>
    %c0_3 = arith.constant 0 : index
    %c0_4 = arith.constant 0 : index
    %c0_5 = arith.constant 0 : index
    %4 = vector.load %arg7[%c0_3, %c0_4, %c0_5] : memref<1x32x128xf32, #tpu.memory_space<vmem>>, vector<1x32x128xf32>
    %c0_6 = arith.constant 0 : index
    %c0_7 = arith.constant 0 : index
    %c0_8 = arith.constant 0 : index
    %5 = vector.load %arg2[%c0_6, %c0_7, %c0_8] : memref<1x32x256xf32, #tpu.memory_space<vmem>>, vector<1x32x128xf32>
    %6 = arith.addf %3, %5 : vector<1x32x128xf32>
    %7 = arith.maximumf %4, %5 : vector<1x32x128xf32>
    %c0_9 = arith.constant 0 : index
    %c0_10 = arith.constant 0 : index
    %c128 = arith.constant 128 : index
    %8 = vector.load %arg2[%c0_9, %c0_10, %c128] : memref<1x32x256xf32, #tpu.memory_space<vmem>>, vector<1x32x128xf32>
    %9 = arith.addf %6, %8 : vector<1x32x128xf32>
    %10 = arith.maximumf %7, %8 : vector<1x32x128xf32>
    %c0_11 = arith.constant 0 : index
    %c0_12 = arith.constant 0 : index
    %c0_13 = arith.constant 0 : index
    %11 = vector.load %arg6[%c0_11, %c0_12, %c0_13] : memref<1x32x128xf32, #tpu.memory_space<vmem>>, vector<1x32x128xf32>
    tpu.vector_store %arg6[%c0_11, %c0_12, %c0_13], %9 {strides = array<i32>} : memref<1x32x128xf32, #tpu.memory_space<vmem>>, vector<1x32x128xf32>,
    %c0_14 = arith.constant 0 : index
    %c0_15 = arith.constant 0 : index
    %c0_16 = arith.constant 0 : index
    %12 = vector.load %arg7[%c0_14, %c0_15, %c0_16] : memref<1x32x128xf32, #tpu.memory_space<vmem>>, vector<1x32x128xf32>
    tpu.vector_store %arg7[%c0_14, %c0_15, %c0_16], %10 {strides = array<i32>} : memref<1x32x128xf32, #tpu.memory_space<vmem>>, vector<1x32x128xf32>,
    %c0_i32_17 = arith.constant 0 : i32
    %13 = arith.cmpi eq, %arg1, %c0_i32_17 : i32
    %14 = arith.extui %13 : i1 to i32
    %c0_i32_18 = arith.constant 0 : i32
    %15 = arith.cmpi ne, %14, %c0_i32_18 : i32
    scf.if %15 {
      %c0_19 = arith.constant 0 : index
      %c0_20 = arith.constant 0 : index
      %c0_21 = arith.constant 0 : index
      %16 = vector.load %arg6[%c0_19, %c0_20, %c0_21] : memref<1x32x128xf32, #tpu.memory_space<vmem>>, vector<1x32x128xf32>
      %cst = arith.constant dense<0.000000e+00> : vector<1x32xf32>
      %17 = vector.multi_reduction <add>, %16, %cst [2] : vector<1x32x128xf32> to vector<1x32xf32>
      %cst_22 = arith.constant 3.906250e-03 : f32
      %18 = vector.broadcast %cst_22 : f32 to vector<1x32xf32>
      %19 = arith.mulf %17, %18 : vector<1x32xf32>
      %c0_23 = arith.constant 0 : index
      %c0_24 = arith.constant 0 : index
      %c0_25 = arith.constant 0 : index
      %20 = vector.load %arg7[%c0_23, %c0_24, %c0_25] : memref<1x32x128xf32, #tpu.memory_space<vmem>>, vector<1x32x128xf32>
      %cst_26 = arith.constant dense<0xFF800000> : vector<1x32xf32>
      %21 = vector.multi_reduction <maximumf>, %20, %cst_26 [2] : vector<1x32x128xf32> to vector<1x32xf32>
      %c0_27 = arith.constant 0 : index
      %c0_28 = arith.constant 0 : index
      %22 = vector.load %arg3[%c0_27, %c0_28] : memref<32x4xf32, #tpu.memory_space<vmem>>, vector<32x4xf32>
      %c0_29 = arith.constant 0 : index
      %c0_30 = arith.constant 0 : index
      %23 = vector.load %arg4[%c0_29, %c0_30] : memref<4x32xf32, #tpu.memory_space<vmem>>, vector<4x32xf32>
      %24 = tpu.concatenate %19, %21 in 0 : vector<1x32xf32>, vector<1x32xf32> -> vector<2x32xf32>
      %cst_31 = arith.constant dense<0.000000e+00> : vector<2x4xf32>
      %25 = tpu.matmul %24, %22, %cst_31 {dimension_numbers = #tpu.dot_dimension_numbers<[1], [0], [0], [1], [0, 0, 1, 1], [], []>} : vector<2x32xf32>, vector<32x4xf32>, vector<2x4xf32> -> vector<2x4xf32>
      %cst_32 = arith.constant 0.000000e+00 : f32
      %26 = vector.broadcast %cst_32 : f32 to vector<2x4xf32>
      %27 = arith.maximumf %25, %26 : vector<2x4xf32>
      %28 = vector.extract_strided_slice %27 {offsets = [0, 0], sizes = [1, 4], strides = [1, 1]} : vector<2x4xf32> to vector<1x4xf32>
      %29 = vector.extract_strided_slice %27 {offsets = [1, 0], sizes = [1, 4], strides = [1, 1]} : vector<2x4xf32> to vector<1x4xf32>
      %30 = arith.addf %28, %29 : vector<1x4xf32>
      %cst_33 = arith.constant dense<0.000000e+00> : vector<1x32xf32>
      %31 = tpu.matmul %30, %23, %cst_33 {dimension_numbers = #tpu.dot_dimension_numbers<[1], [0], [0], [1], [0, 0, 1, 1], [], []>} : vector<1x4xf32>, vector<4x32xf32>, vector<1x32xf32> -> vector<1x32xf32>
      %32 = arith.negf %31 : vector<1x32xf32>
      %33 = math.exp %32 : vector<1x32xf32>
      %cst_34 = arith.constant 1.000000e+00 : f32
      %34 = vector.broadcast %cst_34 : f32 to vector<1x32xf32>
      %35 = arith.addf %34, %33 : vector<1x32xf32>
      %36 = arith.divf %34, %35 : vector<1x32xf32>
      %37 = vector.shape_cast %36 : vector<1x32xf32> to vector<1x32x1xf32>
      %c0_35 = arith.constant 0 : index
      %c0_36 = arith.constant 0 : index
      %c0_37 = arith.constant 0 : index
      %38 = vector.load %arg5[%c0_35, %c0_36, %c0_37] : memref<1x32x1xf32, #tpu.memory_space<vmem>>, vector<1x32x1xf32>
      tpu.vector_store %arg5[%c0_35, %c0_36, %c0_37], %37 {strides = array<i32>} : memref<1x32x1xf32, #tpu.memory_space<vmem>>, vector<1x32x1xf32>,
    } else {
    }
    return
  }
  func.func @transform_0(%arg0: i32, %arg1: i32) -> (i32, i32, i32) {
    %c0_i32 = arith.constant 0 : i32
    %c0_i32_0 = arith.constant 0 : i32
    return %arg0, %c0_i32, %arg1 : i32, i32, i32
  }
  func.func @transform_1(%arg0: i32, %arg1: i32) -> (i32, i32) {
    %c0_i32 = arith.constant 0 : i32
    %c0_i32_0 = arith.constant 0 : i32
    %c0_i32_1 = arith.constant 0 : i32
    return %c0_i32, %c0_i32_0 : i32, i32
  }
  func.func @transform_2(%arg0: i32, %arg1: i32) -> (i32, i32) {
    %c0_i32 = arith.constant 0 : i32
    %c0_i32_0 = arith.constant 0 : i32
    %c0_i32_1 = arith.constant 0 : i32
    return %c0_i32, %c0_i32_0 : i32, i32
  }
  func.func @transform_3(%arg0: i32, %arg1: i32) -> (i32, i32, i32) {
    %c0_i32 = arith.constant 0 : i32
    %c0_i32_0 = arith.constant 0 : i32
    %c0_i32_1 = arith.constant 0 : i32
    return %arg0, %c0_i32, %c0_i32_0 : i32, i32, i32
  }
}

</mosaic_0001>

<bundles_post_ra>
// kernel: tpu_custom_call.1
= control target key start
LH: loop header
LB: loop body
LE: loop exit
PB: predicated region body
PF: predicated region fallthrough
CT: control target
= control target key end

     0   :  { %8 = vsyncpa [#allocation5], 0  ;;  %s980_s0 = inlined_call_operand.hbm [shape: f32[2,32,256], index: 0, kind: input, shape index: {}]   ;;  %s981_s1 = inlined_call_operand.vmem [shape: f32[32,4], index: 1, kind: input, shape index: {}]   ;;  %s982_s2 = inlined_call_operand.vmem [shape: f32[4,32], index: 2, kind: input, shape index: {}]   ;;  %s983_s3 = inlined_call_operand.vmem [shape: f32[2,32,1], index: 3, kind: output, shape index: {}]  }
   0x1   :  { %10 = vsyncpa [#allocation5 + $0x1], 0  ;;  %s839_s12 = smov 0   ;;  %s841_s13 = smov 0  }
   0x2   :  { %s843_s14 = smov 0   ;;  %s845_s15 = smov 0  }
   0x3   :  { %s847_s16 = smov 0   ;;  %s849_s17 = smov 0  }
   0x4 LB: > { %s619_s18 = sadd.s32 4294967295, %s811_s17   ;;  %s28_s19 = sadd.s32 1, %s807_s16  ;;  %s811_s17 = sphi %s849_s17, %s16_s17   ;;  %s807_s16 = sphi %s847_s16, %s991_s16   ;;  %s803_s15 = sphi %s845_s15, %s990_s15   ;;  %s799_s14 = sphi %s843_s14, %s989_s14   ;;  %s795_s13 = sphi %s841_s13, %s988_s13   ;;  %s791_s12 = sphi %s839_s12, %s987_s12  }
   0x5   : > { %p30_p0 = scmp.ge.s32.totalorder %s28_s19, 2  ;;  %s37_s20 = sadd.s32 1, %s799_s14 }
   0x6   : > { %p44_p1 = scmp.ne.s32.totalorder %s799_s14, %s795_s13  ;;  %p45_p2 = scmp.eq.s32.totalorder %s811_s17, 0 }
   0x7   : > { %s993_s19 = smov (%p30_p0, %s28_s19), 0  ;;  %p50_p4 = scmp.ne.s32.totalorder %s795_s13, %s791_s12 }
   0x8   : > { %p875_p3 = por %p45_p2, %p44_p1  ;;  %s32_s22 = ssub.s32 %s807_s16, %s993_s19 }
   0x9   : > { %p51_p5 = scmp.eq.s32.totalorder %s619_s18, 0  ;;  %p35_p6 = scmp.eq.s32.totalorder %s32_s22, 0 }
   0xa   : > { %p673_p8 = scmp.lt.s32.totalorder %s811_s17, 2  ;;  %s148_s25 = sand.u32 1, %s799_s14  }
   0xb   : > { %p882_p7 = por %p51_p5, %p50_p4  ;;  %s636_s26 = sshll.u32 %s807_s16, 10 }
   0xc   : > { %s888_s24 = scalar_select %p35_p6, %s799_s14, %s37_s20  }
   0xd   : > { %s623_s27 = sshll.u32 %s148_s25, 6  ;;  %s895_s30 = scalar_lea.hbm %s980_s0, %s636_s26 }
   0xe   : > { %s152_s4 = scalar_lea.vmem [#allocation4], %s623_s27  ;;  %p899_p9 = pnand %p673_p8, %p875_p3 }
   0xf   : > { %s161_s5 = sshll.u32 %s152_s4, 4  ;;  %s905_s7 = scalar_lea.sflag [#allocation5], %s148_s25  ;;  %s903_s5 = int_to_ptr.vmem [resolvable:$true] %s161_s5 }
  0x10   : > { %s731_s8 = scalar_lea.hbm %s895_s30, 1024  ;;  %p733_p11 = pneg %p899_p9 }
  0x11   : > { %p732_p10 = scmp.ne.s32.totalorder %s895_s30, %s731_s8  ;;  %s736_s11 = scalar_lea.hbm %s980_s0, 2048 }
  0x12   : > { %p737_p0 = scmp.lt.u32.totalorder %s895_s30, %s980_s0  ;;  %p738_p1 = scmp.lt.u32.totalorder %s736_s11, %s731_s8 }
  0x13   : > { %p734_p12 = pnand %p733_p11, %p732_p10  ;;  %p740_p3 = scmp.lt.u32.totalorder %s731_s8, %s895_s30 }
  0x14   : > { %p739_p2 = por %p738_p1, %p737_p0 }
  0x15   : > { %p735_p13 = pneg %p734_p12 }
  0x16   : > { %p741_p4 = por %p740_p3, %p739_p2 }
  0x18   : > { %p742_p5 = pnand %p741_p4, %p735_p13 }
  0x1a   : > { %745 = shalt.err (!%p742_p5)
}
  0x1b   : > { %s746_s20 = scalar_lea.vmem %s903_s5, 1024  ;;  %s813_s21 = smov [#allocation4]  }
  0x1c   : > { %p747_p6 = scmp.ne.s32.totalorder %s903_s5, %s746_s20  ;;  %s751_s22 = sshll.u32 %s813_s21, 4  ;;  %s752_s22 = int_to_ptr.vmem [resolvable:$false] %s751_s22 }
  0x1d   : > { %s753_s25 = scalar_lea.vmem %s752_s22, 2048  ;;  %p754_p12 = scmp.lt.s32.totalorder %s903_s5, %s752_s22 }
  0x1e   : > { %p749_p8 = pnand %p747_p6, %p733_p11  ;;  %p755_p0 = scmp.lt.s32.totalorder %s753_s25, %s746_s20 }
  0x20   : > { %p750_p10 = pneg %p749_p8  ;;  %p756_p1 = por %p755_p0, %p754_p12 }
  0x22   : > { %p757_p2 = pnand %p756_p1, %p750_p10 }
  0x24   : > { %760 = shalt.err (!%p757_p2)
}
  0x25   : > { %s814_s26 = smov 256   ;;  %s815_s27 = smov 16  }
  0x26   : > { %672 = dma.hbm_to_vmem [thread:$0]  (!%p899_p9), %s895_s30, 1024, %s903_s5, %s905_s7, %s814_s26, %s814_s26, %s815_s27  }
  0x27   : > { %p626_p11 = scmp.ge.s32.totalorder %s811_s17, 1  ;;  %p169_p13 = scmp.lt.s32.totalorder %s811_s17, 3 }
  0x29   : > { %p170_p3 = pnand %p626_p11, %p169_p13 }
  0x2a   : > { %s175_s28 = sand.u32 (!%p170_p3), 1, %s795_s13  }
  0x2b   : > { %173 = sbr.rel (%p170_p3) target bundleno = 796 (0x31c), region = 32  ;;  %s627_s29 = sshll.u32 (!%p170_p3), %s175_s28, 6 }
  0x2c   : > { %s176_s4 = scalar_lea.sflag (!%p170_p3), [#allocation5], %s175_s28  ;;  %s179_s8 = scalar_lea.vmem (!%p170_p3), [#allocation4], %s627_s29 }
  0x32   : > { %786 = dma.done.wait (%p882_p7), %s176_s4, 1024  }
  0x33   : > { %788 = vsyncadd (%p882_p7), %s176_s4, 4294966272  ;;  %v230_v0 = vld [vmem:[%s179_s8 + $0x20] sm:$0xff]  ;;  %v242_v1 = vld [vmem:[%s179_s8 + $0x28] sm:$0xff]  ;;  %v816_v19 = vmov 0.0|0.0   ;;  %vm817_vm0 = vmmov 0   ;;  %v818_v23 = vmov 0.0   ;;  %v300_v24 = vlaneseq }
  0x34   : > { %v228_v2 = vld [vmem:[%s179_s8] sm:$0xff]  ;;  %v246_v3 = vadd.f32 %v242_v1, %v230_v0  ;;  %v240_v4 = vld [vmem:[%s179_s8 + $0x8] sm:$0xff]  ;;  %v231_v5 = vld [vmem:[%s179_s8 + $0x30] sm:$0xff]  ;;  %v250_v15 = vmax.f32 %v230_v0, %v242_v1  ;;  %661 = vmatprep.subr.bf16.mxu0 %v816_v19  ;;  %653 = vmatprep.mubr.msk.f32.mxu0 %vm817_vm0, %v818_v23  ;;  %vm311_vm1 = vcmask 130112   ;;  %vm318_vm2 = vcmask 195712   ;;  %p203_p7 = scmp.lt.s32.totalorder %s803_s15, 1 }
  0x35   : > { %v243_v6 = vld [vmem:[%s179_s8 + $0x38] sm:$0xff]  ;;  %v244_v7 = vadd.f32 %v240_v4, %v228_v2  ;;  %v229_v8 = vld [vmem:[%s179_s8 + $0x10] sm:$0xff]  ;;  %v248_v13 = vmax.f32 %v228_v2, %v240_v4  ;;  %v291_v16 = vld [vmem:[%s981_s1] sm:$0xff]  ;;  %656 = vmatprep.subr.mxu1 %v818_v23  ;;  %658 = vmatprep.mubr.msk.f32.mxu1 %vm817_vm0, %v818_v23  ;;  %v301_v25 = vand.u32 127, %v300_v24  ;;  %v303_v28 = vshrl.u32 %v300_v24, 7 }
  0x36   : > { %v241_v9 = vld [vmem:[%s179_s8 + $0x18] sm:$0xff]  ;;  %271 = vadd.xlane.f32.xlu1 %v246_v3  ;;  %v247_v10 = vadd.f32 %v243_v6, %v231_v5  ;;  %v251_v14 = vmax.f32 %v231_v5, %v243_v6  ;;  %v292_v17 = vld [vmem:[%s981_s1 + $0x8] sm:$0xff]  ;;  %v293_v20 = vld [vmem:[%s981_s1 + $0x10] sm:$0xff]  ;;  %vm325_vm3 = vcmask 261312   ;;  %vm352_vm4 = vcmask 1040384   ;;  %s995_s15 = smov (!%p203_p7, %s803_s15), 1 }
  0x37   : > { %267 = vadd.xlane.f32.xlu0 %v244_v7  ;;  %v245_v11 = vadd.f32 %v241_v9, %v229_v8  ;;  %v249_v12 = vmax.f32 %v229_v8, %v241_v9  ;;  %v662_v18 = vpack.c.bf16 %v292_v17, %v291_v16  ;;  %v294_v21 = vld [vmem:[%s981_s1 + $0x18] sm:$0xff]  ;;  %v306_v27 = vadd.s32 4294967288, %v301_v25  ;;  %v295_v61 = vld [vmem:[%s982_s2] sm:$0xf]  ;;  %s637_s20 = sshll.u32 %s995_s15, 5 }
  0x38   : > { %v665_v22 = vpack.c.bf16 %v294_v21, %v293_v20  ;;  %v313_v30 = vadd.s32 4294967280, %v301_v25  ;;  %v304_v33 = vsub.s32 %v301_v25, %v303_v28  ;;  %v320_v35 = vadd.s32 4294967272, %v301_v25  ;;  %s207_s25 = scalar_lea.vmem %s983_s3, %s637_s20 }
  0x39   : > { %663 = vmatpush3.bf16.msra.mxu0 %v662_v18  ;;  %v309_v32 = vsub.s32 %v306_v27, %v303_v28  ;;  %vm354_vm5 = vcmask 261120   ;;  %vm437_vm6 = vcmask 1043456   ;;  %vm433_vm7 = vcmask 31744  }
  0x3a   : > { %273 = vadd.xlane.f32.xlu1 %v247_v10  ;;  %664 = vmatprep.subr.bf16.mxu0 %v816_v19  ;;  %v316_v38 = vsub.s32 %v313_v30, %v303_v28  ;;  %v323_v43 = vsub.s32 %v320_v35, %v303_v28  ;;  %v519_v8 = vsub.s32 0, %v303_v28  ;;  %vm536_vm8 = vcmask 7168  }
  0x3b   : > { %269 = vadd.xlane.f32.xlu0 %v245_v11  ;;  %657 = vmatpush3.msk.msra.mxu1 %vm437_vm6, %v295_v61 }
  0x3d   : > { %666 = vmatpush3.bf16.msra.mxu0 %v665_v22 }
  0x3e   : > { %285 = vmax.xlane.f32.xlu1 %v249_v12 }
  0x3f   : > { %283 = vmax.xlane.f32.xlu0 %v248_v13 }
  0x42   : > { %289 = vmax.xlane.f32.xlu1 %v251_v14 }
  0x43   : > { %287 = vmax.xlane.f32.xlu0 %v250_v15 }
  0xc3   : > { %v272_v26 = vpop.xlane.xlu1 %271 }
  0xc4   : > { %v268_v29 = vpop.xlane.xlu0 %267  ;;  %v277_v39 = vmul.f32 0.00390625, %v272_v26 }
  0xc5   : > { %v275_v34 = vmul.f32 0.00390625, %v268_v29 }
  0xc6   : > { %v317_v49 = vrot.slane %v277_v39, %v316_v38 }
  0xc7   : > { %v274_v31 = vpop.xlane.xlu1 %273  ;;  %v305_v42 = vrot.slane %v275_v34, %v304_v33 }
  0xc8   : > { %v270_v36 = vpop.xlane.xlu0 %269  ;;  %v278_v44 = vmul.f32 0.00390625, %v274_v31 }
  0xc9   : > { %v276_v37 = vmul.f32 0.00390625, %v270_v36 }
  0xca   : > { %v324_v51 = vrot.slane %v278_v44, %v323_v43 }
  0xcb   : > { %v310_v40 = vrot.slane %v276_v37, %v309_v32  ;;  %v286_v41 = vpop.xlane.xlu1 %285 }
  0xcc   : > { %v284_v45 = vpop.xlane.xlu0 %283  ;;  %v339_v47 = vrot.slane %v286_v41, %v309_v32 }
  0xcd   : > { %v312_v46 = vsel %vm311_vm1, %v310_v40, %v305_v42  ;;  %v335_v48 = vrot.slane %v284_v45, %v304_v33 }
  0xce   : > { %v319_v55 = vsel %vm318_vm2, %v317_v49, %v312_v46 }
  0xcf   : > { %v290_v50 = vpop.xlane.xlu1 %289  ;;  %v340_v56 = vsel %vm311_vm1, %v339_v47, %v335_v48  ;;  %v326_v59 = vsel %vm325_vm3, %v324_v51, %v319_v55 }
  0xd0   : > { %v288_v52 = vpop.xlane.xlu0 %287  ;;  %v349_v53 = vrot.slane %v290_v50, %v323_v43 }
  0xd1   : > { %v344_v54 = vrot.slane %v288_v52, %v316_v38 }
  0xd3   : > { %v345_v57 = vsel %vm318_vm2, %v344_v54, %v340_v56 }
  0xd4   : > { %v350_v58 = vsel %vm325_vm3, %v349_v53, %v345_v57 }
  0xd5   : > { %v353_v60 = vsel %vm352_vm4, %v326_v59, %v350_v58 }
  0xd6   : > { %654 = vmatmul.mubr.msk.f32.vlgmr.msra.gmra.mrb[0].mxu0 %vm354_vm5, %v353_v60 }
 0x1a9   : > { %v424_v62 = vpop.f32.mrb[0].mxu0 }
 0x1aa   : > { %v428_v63 = vmax.f32 %v424_v62, 0.0  ;;  %v655_v0 = vpop.f32.mrb[1].mxu0 }
 0x1ac   : > { %v430_v1 = vrot.slane %v428_v63, 1 }
 0x1ae   : > { %v432_v2 = vadd.f32 %v430_v1, %v428_v63 }
 0x1b0   : > { %659 = vmatmul.mubr.msk.f32.vlgmr.msra.gmra.mrb[0].mxu1 %vm433_vm7, %v432_v2 }
 0x283   : > { %v507_v3 = vpop.f32.mrb[0].mxu1 }
 0x284   : > { %v633_v4 = vmul.f32 -1.442695, %v507_v3  ;;  %v660_v5 = vpop.f32.mrb[1].mxu1 }
 0x286   : > { %727 = vpow2.f32 %v633_v4 }
 0x290   : > { %v728_v6 = vpop.eup %727 }
 0x291   : > { %v514_v7 = vadd.f32 1.0, %v728_v6 }
 0x293   : > { %729 = vrcp.f32 %v514_v7 }
 0x29d   : > { %v730_v9 = vpop.eup %729 }
 0x29e   : > { %v520_v10 = vrot.slane %v730_v9, %v519_v8 }
 0x2a0   : > { %526 = vbcast.lane.b32.xlu1 %v520_v10, 264  ;;  %522 = vbcast.lane.b32.xlu0 %v520_v10, 256 }
 0x2a4   : > { %530 = vbcast.lane.b32.xlu1 %v520_v10, 272 }
 0x2a8   : > { %534 = vbcast.lane.b32.xlu1 %v520_v10, 280 }
 0x312   : > { %v527_v11 = vpop.permute.xlu1 %526  ;;  %v523_v12 = vpop.permute.xlu0 %522 }
 0x313   : > { %538 = vst.msk [vmem:[%s207_s25 + $0x8] sm:$0xff] %vm536_vm8, %v527_v11  ;;  %537 = vst.msk [vmem:[%s207_s25] sm:$0xff] %vm536_vm8, %v523_v12 }
 0x316   : > { %v531_v13 = vpop.permute.xlu1 %530 }
 0x317   : > { %539 = vst.msk [vmem:[%s207_s25 + $0x10] sm:$0xff] %vm536_vm8, %v531_v13 }
 0x31a   : > { %v535_v14 = vpop.permute.xlu1 %534 }
 0x31b   : > { %540 = vst.msk [vmem:[%s207_s25 + $0x18] sm:$0xff] %vm536_vm8, %v535_v14 }
 0x31c PF: > { %s16_s17 = sadd.s32 1, %s811_s17   ;;  %s987_s12 = smov %s795_s13 }
 0x31d   : > { %p13_p9 = scmp.ge.s32.totalorder %s16_s17, 4   ;;  %s988_s13 = smov %s799_s14 }
 0x31e   : > { %s989_s14 = smov %s888_s24  ;;  %s990_s15 = smov %s807_s16 }
 0x31f   : > { %s991_s16 = smov %s993_s19  ;;  %15 = sbr.rel (!%p13_p9) target bundleno = 4 (0x4), region = 80 }
 0x326   :  { %562 = vsyncpa [#allocation5], 1 }
 0x327   :  { %564 = vsyncpa [#allocation5 + $0x1], 1 }

</bundles_post_ra>
